<compile_context>
chip_gen: v5e
topology: v5e:2x2
jax: 0.10.0
libtpu: 0.0.40
codegen_flags: <defaults>
</compile_context>

<pallas_src>
import functools

import numpy as np
import jax
import jax.numpy as jnp
from jax.experimental import pallas as pl
from jax.experimental.pallas import tpu as pltpu


# ----------------------------------------------------------------------------
# Bicubic weight-matrix construction (numpy, trace time, cached).
# ----------------------------------------------------------------------------
def _cubic_kernel(x, a=-0.75):
    x = np.abs(x)
    x2 = x * x
    x3 = x2 * x
    return np.where(
        x <= 1.0,
        (a + 2.0) * x3 - (a + 3.0) * x2 + 1.0,
        np.where(x < 2.0, a * x3 - 5.0 * a * x2 + 8.0 * a * x - 4.0 * a, 0.0),
    )


@functools.lru_cache(maxsize=64)
def _bicubic_matrix(in_size, out_size):
    """Weight matrix M (out_size, in_size) so that out = M @ in (1-D bicubic)."""
    M = np.zeros((out_size, in_size), dtype=np.float32)
    scale = in_size / out_size
    for i in range(out_size):
        src = (i + 0.5) * scale - 0.5
        x0 = int(np.floor(src))
        t = src - x0
        taps = [x0 - 1, x0, x0 + 1, x0 + 2]
        ws = _cubic_kernel(np.array([1.0 + t, t, 1.0 - t, 2.0 - t]))
        for idx, w in zip(taps, ws):
            M[i, int(np.clip(idx, 0, in_size - 1))] += w
    return M


def _round_up(x, m):
    return ((x + m - 1) // m) * m


def _geometry(h, w, max_size):
    scale = max_size / float(max(h, w))
    new_h, new_w = round(h * scale), round(w * scale)
    pad_top = (max_size - new_h) // 2      # torchvision pad: [l, t, r, b]
    pad_left = (max_size - new_w) // 2
    return new_h, new_w, pad_top, pad_left


def _vmem_capacity_bytes():
    try:
        return int(pltpu.get_tpu_info().vmem_capacity_bytes)
    except Exception:
        return 64 * 1024 * 1024            # conservative (v7x per-TC)


def _select_num_tiles(h, w, c, max_size, itemsize, force=None):
    """Smallest row-tile count whose working set fits comfortably in VMEM."""
    if force is not None:
        return int(force)
    new_h, _, _, _ = _geometry(h, w, max_size)
    new_h = max(1, new_h)
    wc = w * c
    out_cols = _round_up(max_size * c, 128)
    budget = _vmem_capacity_bytes() // 2   # headroom for Mosaic scratch

    candidates = [1] + [nt for nt in (2, 4, 8, 16, 32)
                        if max_size % nt == 0 and (max_size // nt) % 8 == 0]
    for nt in candidates:
        tr = max_size // nt
        band = min(h, -(-tr * h // new_h) + 8)       # 4-tap support + slack
        img_b = itemsize if nt == 1 else 2           # bf16 band stack when tiled
        need = (2 * band * wc * img_b                # image band (double-buf)
                + 2 * tr * band * 2                  # row-weight tile (bf16)
                + (1 if nt > 1 else 2) * wc * out_cols * 2   # col weights
                + 2 * tr * out_cols * itemsize       # output tile
                + tr * wc * 4 + tr * out_cols * 4)   # matmul temporaries
        if need <= budget:
            return nt
    return candidates[-1]


@functools.lru_cache(maxsize=16)
def _build_weights(h, w, c, max_size, num_tiles):
    """Banded row weights + block-diag col weights (bf16, device-resident)."""
    new_h, new_w, pad_top, pad_left = _geometry(h, w, max_size)
    tile_rows = max_size // num_tiles
    out_cols = _round_up(max_size * c, 128)

    # Row weights with padding folded in (zeros outside [pad_top, pad_top+new_h)).
    wh_pad = np.zeros((max_size, h), dtype=np.float32)
    wh_pad[pad_top:pad_top + new_h] = _bicubic_matrix(h, new_h)

    # Per-tile input-row bands (static at trace time from the banded structure).
    spans = []
    for i in range(num_tiles):
        blk = wh_pad[i * tile_rows:(i + 1) * tile_rows]
        nz = np.nonzero(np.any(blk != 0.0, axis=0))[0]
        spans.append((int(nz[0]), int(nz[-1]) + 1) if nz.size else (0, 0))
    max_span = max(hi - lo for lo, hi in spans)
    band_rows = min(h, _round_up(max(max_span, 8), 16))

    band_lo = []
    wh_band = np.zeros((max_size, band_rows), dtype=np.float32)
    for i, (lo, _hi) in enumerate(spans):
        lo = max(0, min(lo, h - band_rows))          # keep the slice in-bounds
        band_lo.append(lo)
        wh_band[i * tile_rows:(i + 1) * tile_rows] = \
            wh_pad[i * tile_rows:(i + 1) * tile_rows, lo:lo + band_rows]

    # Column weights, block-diagonal per channel, padding folded in.
    ww = _bicubic_matrix(w, new_w)                   # (new_w, w)
    wwc = np.zeros((w * c, out_cols), dtype=np.float32)
    for ch in range(c):
        wwc[ch::c, pad_left * c + ch:(pad_left + new_w) * c:c] = ww.T

    wh_dev = jnp.asarray(wh_band, dtype=jnp.bfloat16)
    wwc_dev = jnp.asarray(wwc, dtype=jnp.bfloat16)
    meta = dict(new_h=new_h, new_w=new_w, pad_top=pad_top, pad_left=pad_left,
                tile_rows=tile_rows, band_rows=band_rows, out_cols=out_cols,
                band_lo=tuple(band_lo))
    return wh_dev, wwc_dev, meta


# ----------------------------------------------------------------------------
# Pallas kernel: two bf16 matmuls (f32 accumulation) over the input-row band,
# optional fill mask, one full aligned store per output-row tile.
# ----------------------------------------------------------------------------
def _resize_pad_kernel(img_ref, wh_ref, wwc_ref, out_ref, *,
                       pad_top, new_h, col_lo, col_hi, fill):
    # img_ref: (1, band_rows, W*C)  input band for this row tile
    # wh_ref:  (tile_rows, band_rows) bf16 band-local row weights (pad folded)
    # wwc_ref: (W*C, out_cols) bf16 block-diag-per-channel col weights
    # out_ref: (tile_rows, out_cols)
    img = img_ref[0].astype(jnp.bfloat16)            # no-op if already bf16
    tmp = jnp.dot(wh_ref[...], img, preferred_element_type=jnp.float32)
    out = jnp.dot(tmp.astype(jnp.bfloat16), wwc_ref[...],
                  preferred_element_type=jnp.float32)

    if fill != 0.0:
        # Pad region is exactly zero from the zero weight rows/cols; replace it
        # with the fill constant.  Mask built from two 1-D iotas + broadcast.
        tr, oc = out.shape
        rows = (pl.program_id(0) * tr
                + jax.lax.broadcasted_iota(jnp.int32, (tr, 1), 0))
        cols = jax.lax.broadcasted_iota(jnp.int32, (1, oc), 1)
        interior = ((rows >= pad_top) & (rows < pad_top + new_h)
                    & (cols >= col_lo) & (cols < col_hi))
        out = jnp.where(interior, out, fill)

    out_ref[...] = out.astype(out_ref.dtype)


# ----------------------------------------------------------------------------
# Wrapper: reproduces ResizeMaxSize.forward semantics for an HWC image.
# ----------------------------------------------------------------------------
def resize_max_size(img_hwc, max_size, fill=0.0, *, force_num_tiles=None):
    h, w, c = img_hwc.shape
    scale = max_size / float(max(h, w))
    if scale == 1.0:
        return img_hwc                                # reference returns input

    if not jnp.issubdtype(img_hwc.dtype, jnp.floating):
        img_hwc = img_hwc.astype(jnp.float32)         # TODO(synk): uint8 rounding
    out_dtype = img_hwc.dtype

    num_tiles = _select_num_tiles(h, w, c, max_size, img_hwc.dtype.itemsize,
                                  force=force_num_tiles)
    wh_dev, wwc_dev, meta = _build_weights(h, w, c, max_size, num_tiles)
    tile_rows = meta["tile_rows"]
    band_rows = meta["band_rows"]
    out_cols = meta["out_cols"]
    band_lo = meta["band_lo"]
    wc = w * c

    img2d = img_hwc.reshape(h, wc)                    # free collapse (HWC layout)
    if num_tiles == 1 and band_rows == h and band_lo[0] == 0:
        img_bands = img2d.reshape(1, h, wc)           # free; cast inside kernel
    else:
        # Banded copy: one extra wrapper pass, but per-tile DMA / VMEM only sees
        # the band (and is already bf16).
        img_bands = jnp.stack(
            [jax.lax.slice_in_dim(img2d, lo, lo + band_rows, axis=0)
             for lo in band_lo]).astype(jnp.bfloat16)

    kernel = functools.partial(
        _resize_pad_kernel,
        pad_top=meta["pad_top"], new_h=meta["new_h"],
        col_lo=meta["pad_left"] * c,
        col_hi=(meta["pad_left"] + meta["new_w"]) * c,
        fill=float(fill),
    )

    cap = _vmem_capacity_bytes()
    vmem_limit = max(16 * 1024 * 1024,
                     min(cap * 3 // 4, 100 * 1024 * 1024))

    def call(single_buffer_consts):
        wwc_kwargs = {}
        if single_buffer_consts:
            wwc_kwargs["pipeline_mode"] = pl.Buffered(1)   # constant operand
        grid_spec = pltpu.PrefetchScalarGridSpec(
            num_scalar_prefetch=0,
            grid=(num_tiles,),
            in_specs=[
                pl.BlockSpec((1, band_rows, wc), lambda i: (i, 0, 0)),   # band
                pl.BlockSpec((tile_rows, band_rows), lambda i: (i, 0)),  # wh tile
                pl.BlockSpec((wc, out_cols), lambda i: (0, 0),           # wwc
                             **wwc_kwargs),
            ],
            out_specs=pl.BlockSpec((tile_rows, out_cols), lambda i: (i, 0)),
        )
        return pl.pallas_call(
            kernel,
            out_shape=jax.ShapeDtypeStruct((max_size, out_cols), out_dtype),
            grid_spec=grid_spec,
            compiler_params=pltpu.CompilerParams(
                dimension_semantics=("parallel",),
                vmem_limit_bytes=int(vmem_limit),
            ),
        )(img_bands, wh_dev, wwc_dev)

    if num_tiles > 1:
        try:
            out2d = call(True)       # single-buffer the constant col weights
        except Exception:
            out2d = call(False)      # safe fallback if Buffered(1) is rejected
    else:
        out2d = call(False)

    if out_cols != max_size * c:
        out2d = out2d[:, :max_size * c]
    return out2d.reshape(max_size, max_size, c)       # free split of the lane dim


if __name__ == "__main__":
    max_size = 128
    H, W, C = 48, 80, 3   # longest side 80 -> scale 1.6 -> resized (77, 128)

    key = jax.random.PRNGKey(0)
    img = jax.random.uniform(key, (H, W, C), dtype=jnp.float32)

    scale = max_size / float(max(H, W))
    new_h, new_w = round(H * scale), round(W * scale)
    pad_top = (max_size - new_h) // 2
    pad_left = (max_size - new_w) // 2

    # Dense f32 reference of the same separable bicubic.
    wh_ref = _bicubic_matrix(H, new_h)
    ww_ref = _bicubic_matrix(W, new_w)
    ref = np.einsum('nh,hwc,mw->nmc', wh_ref, np.asarray(img), ww_ref)

    def check(out, fill_val):
        assert out.shape == (max_size, max_size, C), out.shape
        assert out.dtype == jnp.float32
        o = np.asarray(out)
        # Padded rows must be exactly the fill value.
        assert np.all(o[:pad_top] == fill_val)
        assert np.all(o[pad_top + new_h:] == fill_val)
        assert np.all(o[:, :pad_left] == fill_val)
        assert np.all(o[:, pad_left + new_w:] == fill_val)
        got = o[pad_top:pad_top + new_h, pad_left:pad_left + new_w]
        # bf16 MXU inputs with f32 accumulation -> loose tolerance.
        assert np.allclose(got, ref, atol=3e-2, rtol=3e-2), \
            float(np.max(np.abs(got - ref)))

    # Default path (small working set -> single row tile, grid=(1,)).
    out = jax.block_until_ready(resize_max_size(img, max_size, fill=0.0))
    check(out, 0.0)

    # Non-zero fill path (exercises the in-kernel broadcast mask).
    out_f = jax.block_until_ready(resize_max_size(img, max_size, fill=0.5))
    check(out_f, 0.5)

    # Forced multi-tile path: exercises the banded H-blocking + per-tile bands
    # (and the single-buffered constant-operand spec, with fallback).
    out_mt = jax.block_until_ready(
        resize_max_size(img, max_size, fill=0.0, force_num_tiles=2))
    check(out_mt, 0.0)

    print("KERNEL_OK")
</pallas_src>

<mosaic_0001>
module attributes {stable_mosaic.version = 11 : i64} {
  func.func @_resize_pad_kernel(%arg0: i32, %arg1: memref<1x48x240xf32, #tpu.memory_space<vmem>>, %arg2: memref<128x48xbf16, #tpu.memory_space<vmem>>, %arg3: memref<240x384xbf16, #tpu.memory_space<vmem>>, %arg4: memref<128x384xf32, #tpu.memory_space<vmem>>) attributes {dimension_semantics = [#tpu.dimension_semantics<parallel>], iteration_bounds = array<i64: 1>, scalar_prefetch = 0 : i64, scratch_operands = 0 : i64, tpu.core_type = #tpu.core_type<tc>, window_params = [{transform_indices = @transform_0, window_bounds = array<i64: 1, 48, 240>}, {transform_indices = @transform_1, window_bounds = array<i64: 128, 48>}, {pipeline_mode = #tpu.pipeline_mode<synchronous>, transform_indices = @transform_2, window_bounds = array<i64: 240, 384>}, {transform_indices = @transform_3, window_bounds = array<i64: 128, 384>}]} {
    %c0 = arith.constant 0 : index
    %c0_0 = arith.constant 0 : index
    %c0_1 = arith.constant 0 : index
    %0 = vector.load %arg1[%c0, %c0_0, %c0_1] : memref<1x48x240xf32, #tpu.memory_space<vmem>>, vector<1x48x240xf32>
    %1 = vector.shape_cast %0 : vector<1x48x240xf32> to vector<48x240xf32>
    %2 = arith.truncf %1 : vector<48x240xf32> to vector<48x240xbf16>
    %c0_2 = arith.constant 0 : index
    %c0_3 = arith.constant 0 : index
    %3 = vector.load %arg2[%c0_2, %c0_3] : memref<128x48xbf16, #tpu.memory_space<vmem>>, vector<128x48xbf16>
    %cst = arith.constant dense<0.000000e+00> : vector<128x240xf32>
    %4 = tpu.matmul %3, %2, %cst {dimension_numbers = #tpu.dot_dimension_numbers<[1], [0], [0], [1], [0, 0, 1, 1], [], []>} : vector<128x48xbf16>, vector<48x240xbf16>, vector<128x240xf32> -> vector<128x240xf32>
    %5 = arith.truncf %4 : vector<128x240xf32> to vector<128x240xbf16>
    %c0_4 = arith.constant 0 : index
    %c0_5 = arith.constant 0 : index
    %6 = vector.load %arg3[%c0_4, %c0_5] : memref<240x384xbf16, #tpu.memory_space<vmem>>, vector<240x384xbf16>
    %cst_6 = arith.constant dense<0.000000e+00> : vector<128x384xf32>
    %7 = tpu.matmul %5, %6, %cst_6 {dimension_numbers = #tpu.dot_dimension_numbers<[1], [0], [0], [1], [0, 0, 1, 1], [], []>} : vector<128x240xbf16>, vector<240x384xbf16>, vector<128x384xf32> -> vector<128x384xf32>
    %c0_7 = arith.constant 0 : index
    %c0_8 = arith.constant 0 : index
    %8 = vector.load %arg4[%c0_7, %c0_8] : memref<128x384xf32, #tpu.memory_space<vmem>>, vector<128x384xf32>
    tpu.vector_store %arg4[%c0_7, %c0_8], %7 {strides = array<i32>} : memref<128x384xf32, #tpu.memory_space<vmem>>, vector<128x384xf32>,
    return
  }
  func.func @transform_0(%arg0: i32) -> (i32, i32, i32) {
    %c0_i32 = arith.constant 0 : i32
    %c0_i32_0 = arith.constant 0 : i32
    %c0_i32_1 = arith.constant 0 : i32
    return %arg0, %c0_i32, %c0_i32_0 : i32, i32, i32
  }
  func.func @transform_1(%arg0: i32) -> (i32, i32) {
    %c0_i32 = arith.constant 0 : i32
    %c0_i32_0 = arith.constant 0 : i32
    return %arg0, %c0_i32 : i32, i32
  }
  func.func @transform_2(%arg0: i32) -> (i32, i32) {
    %c0_i32 = arith.constant 0 : i32
    %c0_i32_0 = arith.constant 0 : i32
    %c0_i32_1 = arith.constant 0 : i32
    return %c0_i32, %c0_i32_0 : i32, i32
  }
  func.func @transform_3(%arg0: i32) -> (i32, i32) {
    %c0_i32 = arith.constant 0 : i32
    %c0_i32_0 = arith.constant 0 : i32
    return %arg0, %c0_i32 : i32, i32
  }
}

</mosaic_0001>

<bundles_post_ra>
// kernel: tpu_custom_call.1
= control target key start
LH: loop header
LB: loop body
LE: loop exit
PB: predicated region body
PF: predicated region fallthrough
CT: control target
= control target key end

     0   :  { %8 = vsyncpa [#allocation3], 0  ;;  %s1522_s0 = inlined_call_operand.hbm [shape: f32[1,48,240], index: 0, kind: input, shape index: {}]   ;;  %s1523_s1 = inlined_call_operand.vmem [shape: bf16[128,48], index: 1, kind: input, shape index: {}]   ;;  %s1524_s2 = inlined_call_operand.hbm [shape: bf16[240,384], index: 2, kind: input, shape index: {}]   ;;  %s1525_s3 = inlined_call_operand.hbm [shape: f32[128,384], index: 3, kind: output, shape index: {}]  }
   0x1   :  { %9 = vsyncpa [#allocation6], 0 }
   0x2   :  { %10 = vsyncpa [#allocation4], 0  ;;  %s15_s14 = sshll.u32 %s1522_s0, 4  ;;  %s1340_s15 = smov [#allocation2]   ;;  %s16_s14 = int_to_ptr.hbm [resolvable:$true] %s15_s14 }
   0x3   :  { %s17_s16 = sshll.u32 %s1340_s15, 4  ;;  %s30_s19 = sshll.u32 %s1524_s2, 4  ;;  %s18_s16 = int_to_ptr.vmem [resolvable:$true] %s17_s16  ;;  %s31_s19 = int_to_ptr.hbm [resolvable:$true] %s30_s19 }
   0x4   :  { %s1341_s20 = smov 256   ;;  %s1342_s21 = smov 16  }
   0x5   :  { %23 = dma.hbm_to_vmem [thread:$0]  %s16_s14, 1536, %s18_s16, [#allocation3], %s1341_s20, %s1341_s20, %s1342_s21  }
   0x6   :  { %s1343_s22 = smov [#allocation5]   ;;  %s1344_s24 = smov 192  }
   0x7   :  { %s32_s23 = sshll.u32 %s1343_s22, 4  ;;  %s1345_s25 = smov 12   ;;  %s33_s23 = int_to_ptr.vmem [resolvable:$true] %s32_s23 }
   0x8   :  { %38 = dma.hbm_to_vmem [thread:$0]  %s31_s19, 5760, %s33_s23, [#allocation6], %s1344_s24, %s1344_s24, %s1345_s25  }
   0x9   :  { %1334 = dma.done.wait [#allocation3], 1536  }
   0xa   :  { %1335 = vsyncadd [#allocation3], 4294965760 }
   0xb   :  { %1336 = dma.done.wait [#allocation6], 5760  }
   0xc   :  { %1337 = vsyncadd [#allocation6], 4294961536  ;;  %v56_v0 = vld [vmem:[#allocation2 + $0x40] sm:$0xff]  ;;  %v58_v1 = vld [vmem:[#allocation2 + $0x50] sm:$0xff]  ;;  %vm122_vm0 = vcmask 392192   ;;  %vm561_vm1 = vcmask 916480  }
   0xd   :  { %v57_v2 = vld [vmem:[#allocation2 + $0x48] sm:$0xff]  ;;  %v64_v3 = vpack.c.bf16 %v58_v1, %v56_v0  ;;  %v59_v4 = vld [vmem:[#allocation2 + $0x58] sm:$0xff]  ;;  %v52_v5 = vld [vmem:[#allocation2 + $0x20] sm:$0xff]  ;;  %s934_s16 = sshll.u32 %s1525_s3, 4  ;;  %s1347_s17 = smov 384   ;;  %s935_s16 = int_to_ptr.hbm [resolvable:$true] %s934_s16 }
   0xe   :  { %v54_v6 = vld [vmem:[#allocation2 + $0x30] sm:$0xff]  ;;  %v65_v7 = vpack.c.bf16 %v59_v4, %v57_v2  ;;  %v53_v8 = vld [vmem:[#allocation2 + $0x28] sm:$0xff]  ;;  %v55_v9 = vld [vmem:[#allocation2 + $0x38] sm:$0xff]  ;;  %s1348_s18 = smov 24  }
   0xf   :  { %152 = vmatpush.bf16.msra.mxu0 %v64_v3  ;;  %v62_v10 = vpack.c.bf16 %v54_v6, %v52_v5  ;;  %v63_v11 = vpack.c.bf16 %v55_v9, %v53_v8  ;;  %v48_v12 = vld [vmem:[#allocation2] sm:$0xff]  ;;  %v50_v13 = vld [vmem:[#allocation2 + $0x10] sm:$0xff]  ;;  %v49_v14 = vld [vmem:[#allocation2 + $0x8] sm:$0xff] }
  0x10   :  { %201 = vmatpush.bf16.msra.mxu1 %v65_v7  ;;  %v51_v15 = vld [vmem:[#allocation2 + $0x18] sm:$0xff]  ;;  %v60_v16 = vpack.c.bf16 %v50_v13, %v48_v12  ;;  %v1200_v18 = vld [vmem:[%s1523_s1] sm:$0xff]  ;;  %v1201_v19 = vld [vmem:[%s1523_s1 + $0x8] sm:$0xff] }
  0x11   :  { %v61_v17 = vpack.c.bf16 %v51_v15, %v49_v14  ;;  %v1202_v20 = vld [vmem:[%s1523_s1 + $0x10] sm:$0xff]  ;;  %v1203_v21 = vld [vmem:[%s1523_s1 + $0x18] sm:$0xff]  ;;  %v1204_v22 = vld [vmem:[%s1523_s1 + $0x20] sm:$0xff] }
  0x12   :  { %v1082_v23 = vld [vmem:[#allocation5 + $0xa8] sm:$0xf]  ;;  %v1230_v24 = vld [vmem:[#allocation5 + $0xb0] sm:$0xf0]  ;;  %v1229_v25 = vld [vmem:[#allocation5 + $0xac] sm:$0xf] }
  0x13   :  { %153 = vmatpush.bf16.msra.mxu0 %v62_v10  ;;  %v1083_v26 = vor.u32 %v1230_v24, %v1082_v23  ;;  %v1084_v27 = vld [vmem:[#allocation5 + $0xb4] sm:$0xf0]  ;;  %v1070_v28 = vld [vmem:[#allocation5 + $0x90] sm:$0xf]  ;;  %v1227_v29 = vld [vmem:[#allocation5 + $0x98] sm:$0xf0] }
  0x14   :  { %202 = vmatpush.bf16.msra.mxu1 %v63_v11  ;;  %v1087_v30 = vor.u32 %v1229_v25, %v1084_v27  ;;  %v1166_v31 = vld [vmem:[#allocation5 + $0x150] sm:$0xf]  ;;  %v1251_v32 = vld [vmem:[#allocation5 + $0x158] sm:$0xf0]  ;;  %v1226_v33 = vld [vmem:[#allocation5 + $0x94] sm:$0xf]  ;;  %v1071_v34 = vor.u32 %v1227_v29, %v1070_v28 }
  0x15   :  { %586 = vmatpush.bf16.msra.mxu2 %v1083_v26  ;;  %v1167_v35 = vor.u32 %v1251_v32, %v1166_v31  ;;  %v1072_v36 = vld [vmem:[#allocation5 + $0x9c] sm:$0xf0]  ;;  %v1250_v37 = vld [vmem:[#allocation5 + $0x154] sm:$0xf]  ;;  %v1205_v41 = vld [vmem:[%s1523_s1 + $0x28] sm:$0xff] }
  0x16   :  { %v1168_v38 = vld [vmem:[#allocation5 + $0x15c] sm:$0xf0]  ;;  %v1075_v39 = vor.u32 %v1226_v33, %v1072_v36  ;;  %v1058_v42 = vld [vmem:[#allocation5 + $0x78] sm:$0xf]  ;;  %v1224_v43 = vld [vmem:[#allocation5 + $0x80] sm:$0xf0] }
  0x17   :  { %154 = vmatpush.bf16.msra.mxu0 %v60_v16  ;;  %v1171_v40 = vor.u32 %v1250_v37, %v1168_v38  ;;  %636 = vmatpush.bf16.msra.mxu3 %v1167_v35  ;;  %v1154_v44 = vld [vmem:[#allocation5 + $0x138] sm:$0xf]  ;;  %v1059_v45 = vor.u32 %v1224_v43, %v1058_v42  ;;  %v1248_v46 = vld [vmem:[#allocation5 + $0x140] sm:$0xf0]  ;;  %v1223_v47 = vld [vmem:[#allocation5 + $0x7c] sm:$0xf] }
  0x18   :  { %203 = vmatpush.bf16.msra.mxu1 %v61_v17  ;;  %v1060_v48 = vld [vmem:[#allocation5 + $0x84] sm:$0xf0]  ;;  %v1155_v49 = vor.u32 %v1248_v46, %v1154_v44  ;;  %v1247_v51 = vld [vmem:[#allocation5 + $0x13c] sm:$0xf]  ;;  %v1046_v53 = vld [vmem:[#allocation5 + $0x60] sm:$0xf] }
  0x19   :  { %587 = vmatpush.bf16.msra.mxu2 %v1071_v34  ;;  %v1063_v50 = vor.u32 %v1223_v47, %v1060_v48  ;;  %v1156_v52 = vld [vmem:[#allocation5 + $0x144] sm:$0xf0]  ;;  %v1221_v55 = vld [vmem:[#allocation5 + $0x68] sm:$0xf0]  ;;  %v1142_v56 = vld [vmem:[#allocation5 + $0x120] sm:$0xf] }
  0x1a   :  { %980 = vmatmul.msk.bf16.vlgmr.msra.gmra.mxu0 %vm122_vm0, %v1200_v18  ;;  %v1159_v54 = vor.u32 %v1247_v51, %v1156_v52  ;;  %v1245_v57 = vld [vmem:[#allocation5 + $0x128] sm:$0xf0]  ;;  %v1047_v58 = vor.u32 %v1221_v55, %v1046_v53  ;;  %v1220_v60 = vld [vmem:[#allocation5 + $0x64] sm:$0xf]  ;;  %v1048_v61 = vld [vmem:[#allocation5 + $0x6c] sm:$0xf0] }
  0x1b   :  { %988 = vmatmul.msk.bf16.vlgmr.msra.gmra.mxu1 %vm122_vm0, %v1200_v18  ;;  %684 = vmatpush.bf16.msrb.mxu0 %v1087_v30  ;;  %v1143_v59 = vor.u32 %v1245_v57, %v1142_v56  ;;  %v1244_v62 = vld [vmem:[#allocation5 + $0x124] sm:$0xf]  ;;  %v1051_v63 = vor.u32 %v1220_v60, %v1048_v61  ;;  %v1144_v0 = vld [vmem:[#allocation5 + $0x12c] sm:$0xf0]  ;;  %v1034_v1 = vld [vmem:[#allocation5 + $0x48] sm:$0xf] }
  0x1c   :  { %734 = vmatpush.bf16.msrb.mxu1 %v1171_v40  ;;  %637 = vmatpush.bf16.msra.mxu3 %v1155_v49  ;;  %v1218_v2 = vld [vmem:[#allocation5 + $0x50] sm:$0xf0]  ;;  %v1147_v3 = vor.u32 %v1244_v62, %v1144_v0  ;;  %v1130_v4 = vld [vmem:[#allocation5 + $0x108] sm:$0xf]  ;;  %v1217_v6 = vld [vmem:[#allocation5 + $0x4c] sm:$0xf] }
  0x1d   :  { %588 = vmatpush.bf16.msra.mxu2 %v1059_v45  ;;  %v1242_v5 = vld [vmem:[#allocation5 + $0x110] sm:$0xf0]  ;;  %v1035_v7 = vor.u32 %v1218_v2, %v1034_v1  ;;  %v1036_v8 = vld [vmem:[#allocation5 + $0x54] sm:$0xf0]  ;;  %v1241_v9 = vld [vmem:[#allocation5 + $0x10c] sm:$0xf] }
  0x1e   :  { %v1132_v10 = vld [vmem:[#allocation5 + $0x114] sm:$0xf0]  ;;  %v1131_v11 = vor.u32 %v1242_v5, %v1130_v4  ;;  %v1039_v12 = vor.u32 %v1217_v6, %v1036_v8  ;;  %v1206_v14 = vld [vmem:[%s1523_s1 + $0x30] sm:$0xff]  ;;  %v1215_v16 = vld [vmem:[#allocation5 + $0x38] sm:$0xf0] }
  0x1f   :  { %685 = vmatpush.bf16.msrb.mxu0 %v1075_v39  ;;  %v1135_v13 = vor.u32 %v1241_v9, %v1132_v10  ;;  %v1022_v15 = vld [vmem:[#allocation5 + $0x30] sm:$0xf]  ;;  %v1238_v24 = vld [vmem:[#allocation5 + $0xf4] sm:$0xf]  ;;  %v1120_v25 = vld [vmem:[#allocation5 + $0xfc] sm:$0xf0] }
  0x20   :  { %735 = vmatpush.bf16.msrb.mxu1 %v1159_v54  ;;  %638 = vmatpush.bf16.msra.mxu3 %v1143_v59  ;;  %v1118_v17 = vld [vmem:[#allocation5 + $0xf0] sm:$0xf]  ;;  %v1023_v18 = vor.u32 %v1215_v16, %v1022_v15  ;;  %v1123_v26 = vor.u32 %v1238_v24, %v1120_v25  ;;  %v1010_v27 = vld [vmem:[#allocation5 + $0x18] sm:$0xf]  ;;  %v1212_v28 = vld [vmem:[#allocation5 + $0x20] sm:$0xf0] }
  0x21   :  { %589 = vmatpush.bf16.msra.mxu2 %v1047_v58  ;;  %v1106_v29 = vld [vmem:[#allocation5 + $0xd8] sm:$0xf]  ;;  %v1011_v30 = vor.u32 %v1212_v28, %v1010_v27  ;;  %v1236_v31 = vld [vmem:[#allocation5 + $0xe0] sm:$0xf0]  ;;  %v1211_v32 = vld [vmem:[#allocation5 + $0x1c] sm:$0xf] }
  0x22   :  { %v1012_v33 = vld [vmem:[#allocation5 + $0x24] sm:$0xf0]  ;;  %v1107_v34 = vor.u32 %v1236_v31, %v1106_v29  ;;  %v1235_v36 = vld [vmem:[#allocation5 + $0xdc] sm:$0xf]  ;;  %v998_v39 = vld [vmem:[#allocation5] sm:$0xf] }
  0x23   :  { %686 = vmatpush.bf16.msrb.mxu0 %v1063_v50  ;;  %v1015_v35 = vor.u32 %v1211_v32, %v1012_v33  ;;  %v1108_v37 = vld [vmem:[#allocation5 + $0xe4] sm:$0xf0]  ;;  %v1209_v40 = vld [vmem:[#allocation5 + $0x8] sm:$0xf0]  ;;  %v1208_v44 = vld [vmem:[#allocation5 + $0x4] sm:$0xf] }
  0x24   :  { %736 = vmatpush.bf16.msrb.mxu1 %v1147_v3  ;;  %639 = vmatpush.bf16.msra.mxu3 %v1131_v11  ;;  %v1111_v38 = vor.u32 %v1235_v36, %v1108_v37  ;;  %v999_v42 = vor.u32 %v1209_v40, %v998_v39  ;;  %v1233_v43 = vld [vmem:[#allocation5 + $0xc8] sm:$0xf0]  ;;  %v1000_v45 = vld [vmem:[#allocation5 + $0xc] sm:$0xf0]  ;;  %v1232_v48 = vld [vmem:[#allocation5 + $0xc4] sm:$0xf] }
  0x25   :  { %590 = vmatpush.bf16.msra.mxu2 %v1035_v7  ;;  %v1003_v47 = vor.u32 %v1208_v44, %v1000_v45  ;;  %v1096_v49 = vld [vmem:[#allocation5 + $0xcc] sm:$0xf0]  ;;  %v1231_v52 = vld [vmem:[#allocation5 + $0xb8] sm:$0xf0]  ;;  %v1174_v53 = vld [vmem:[#allocation5 + $0x158] sm:$0xf] }
  0x26   :  { %v1099_v50 = vor.u32 %v1232_v48, %v1096_v49  ;;  %v1090_v51 = vld [vmem:[#allocation5 + $0xb0] sm:$0xf]  ;;  %v1252_v55 = vld [vmem:[#allocation5 + $0x160] sm:$0xf0]  ;;  %v1207_v57 = vld [vmem:[%s1523_s1 + $0x38] sm:$0xff]  ;;  %s1346_s1 = smov [#allocation7]  }
  0x27   :  { %687 = vmatpush.bf16.msrb.mxu0 %v1051_v63  ;;  %v1091_v54 = vor.u32 %v1231_v52, %v1090_v51  ;;  %v1175_v56 = vor.u32 %v1252_v55, %v1174_v53  ;;  %v1078_v58 = vld [vmem:[#allocation5 + $0x98] sm:$0xf]  ;;  %v1228_v59 = vld [vmem:[#allocation5 + $0xa0] sm:$0xf0]  ;;  %v1162_v60 = vld [vmem:[#allocation5 + $0x140] sm:$0xf] }
  0x28   :  { %737 = vmatpush.bf16.msrb.mxu1 %v1135_v13  ;;  %v1079_v61 = vor.u32 %v1228_v59, %v1078_v58  ;;  %v1249_v62 = vld [vmem:[#allocation5 + $0x148] sm:$0xf0]  ;;  %v1066_v6 = vld [vmem:[#allocation5 + $0x80] sm:$0xf]  ;;  %v1150_v11 = vld [vmem:[#allocation5 + $0x128] sm:$0xf] }
  0x29   :  { %591 = vmatpush.bf16.msra.mxu2 %v1023_v18  ;;  %v1163_v63 = vor.u32 %v1249_v62, %v1162_v60  ;;  %v1225_v7 = vld [vmem:[#allocation5 + $0x88] sm:$0xf0]  ;;  %v1054_v18 = vld [vmem:[#allocation5 + $0x68] sm:$0xf]  ;;  %v1243_v24 = vld [vmem:[#allocation5 + $0x118] sm:$0xf0] }
  0x2a   :  { %981 = vmatmul.msk.bf16.gmra.mxu0 %vm122_vm0, %v1201_v19  ;;  %v1067_v8 = vor.u32 %v1225_v7, %v1066_v6  ;;  %v1219_v31 = vld [vmem:[#allocation5 + $0x58] sm:$0xf0]  ;;  %v1240_v36 = vld [vmem:[#allocation5 + $0x100] sm:$0xf0]  ;;  %v1237_v48 = vld [vmem:[#allocation5 + $0xe8] sm:$0xf0] }
  0x2b   :  { %989 = vmatmul.msk.bf16.gmra.mxu1 %vm122_vm0, %v1201_v19  ;;  %688 = vmatpush.bf16.msrb.mxu0 %v1039_v12  ;;  %v1239_v19 = vld [vmem:[#allocation5 + $0xf8] sm:$0xf0]  ;;  %v1246_v12 = vld [vmem:[#allocation5 + $0x130] sm:$0xf0]  ;;  %v1213_v55 = vld [vmem:[#allocation5 + $0x28] sm:$0xf0] }
  0x2c   :  { %738 = vmatpush.bf16.msrb.mxu1 %v1123_v26  ;;  %v1151_v13 = vor.u32 %v1246_v12, %v1150_v11  ;;  %s932_s13 = sshll.u32 %s1346_s1, 4  ;;  %s933_s13 = int_to_ptr.vmem [resolvable:$true] %s932_s13 }
  0x2d   :  { %592 = vmatpush.bf16.msra.mxu2 %v1011_v30  ;;  %v1042_v30 = vld [vmem:[#allocation5 + $0x50] sm:$0xf] }
  0x2e   :  { %v1043_v32 = vor.u32 %v1219_v31, %v1042_v30 }
  0x30   :  { %739 = vmatpush.bf16.msrb.mxu1 %v1111_v38 }
  0x31   :  { %593 = vmatpush.bf16.msra.mxu2 %v999_v42  ;;  %v1030_v42 = vld [vmem:[#allocation5 + $0x38] sm:$0xf] }
  0x34   :  { %740 = vmatpush.bf16.msrb.mxu1 %v1099_v50 }
  0x35   :  { %832 = vmatpush.bf16.msrb.mxu2 %v1175_v56 }
  0x39   :  { %833 = vmatpush.bf16.msrb.mxu2 %v1163_v63  ;;  %v1102_v63 = vld [vmem:[#allocation5 + $0xc8] sm:$0xf] }
  0x3a   :  { %982 = vmatmul.msk.bf16.gmra.mxu0 %vm122_vm0, %v1202_v20 }
  0x3b   :  { %990 = vmatmul.msk.bf16.gmra.mxu1 %vm122_vm0, %v1202_v20  ;;  %v1214_v20 = vld [vmem:[#allocation5 + $0x34] sm:$0xf] }
  0x3d   :  { %834 = vmatpush.bf16.msrb.mxu2 %v1151_v13 }
  0x4a   :  { %983 = vmatmul.msk.bf16.gmra.mxu0 %vm122_vm0, %v1203_v21 }
  0x4b   :  { %991 = vmatmul.msk.bf16.gmra.mxu1 %vm122_vm0, %v1203_v21  ;;  %v1024_v21 = vld [vmem:[#allocation5 + $0x3c] sm:$0xf0] }
  0x4c   :  { %v1027_v23 = vor.u32 %v1214_v20, %v1024_v21 }
  0x4e   :  { %689 = vmatpush.bf16.msrb.mxu0 %v1027_v23  ;;  %v1138_v23 = vld [vmem:[#allocation5 + $0x110] sm:$0xf] }
  0x4f   :  { %v1139_v25 = vor.u32 %v1243_v24, %v1138_v23 }
  0x51   :  { %835 = vmatpush.bf16.msrb.mxu2 %v1139_v25 }
  0x52   :  { %690 = vmatpush.bf16.msrb.mxu0 %v1015_v35  ;;  %v1126_v35 = vld [vmem:[#allocation5 + $0xf8] sm:$0xf] }
  0x53   :  { %v1127_v37 = vor.u32 %v1240_v36, %v1126_v35 }
  0x55   :  { %836 = vmatpush.bf16.msrb.mxu2 %v1127_v37 }
  0x56   :  { %691 = vmatpush.bf16.msrb.mxu0 %v1003_v47  ;;  %v1114_v47 = vld [vmem:[#allocation5 + $0xe0] sm:$0xf] }
  0x57   :  { %v1115_v49 = vor.u32 %v1237_v48, %v1114_v47 }
  0x59   :  { %837 = vmatpush.bf16.msrb.mxu2 %v1115_v49 }
  0x5a   :  { %984 = vmatmul.msk.bf16.gmra.mxu0 %vm122_vm0, %v1204_v22 }
  0x5b   :  { %992 = vmatmul.msk.bf16.gmra.mxu1 %vm122_vm0, %v1204_v22  ;;  %v1119_v22 = vor.u32 %v1239_v19, %v1118_v17  ;;  %v1222_v19 = vld [vmem:[#allocation5 + $0x70] sm:$0xf0] }
  0x5c   :  { %v1055_v20 = vor.u32 %v1222_v19, %v1054_v18 }
  0x5d   :  { %640 = vmatpush.bf16.msra.mxu3 %v1119_v22 }
  0x61   :  { %641 = vmatpush.bf16.msra.mxu3 %v1107_v34 }
  0x6a   :  { %985 = vmatmul.msk.bf16.gmra.mxu0 %vm122_vm0, %v1205_v41 }
  0x6b   :  { %993 = vmatmul.msk.bf16.gmra.mxu1 %vm122_vm0, %v1205_v41  ;;  %v1094_v41 = vld [vmem:[#allocation5 + $0xc0] sm:$0xf] }
  0x6c   :  { %v1095_v46 = vor.u32 %v1233_v43, %v1094_v41  ;;  %v1216_v43 = vld [vmem:[#allocation5 + $0x40] sm:$0xf0] }
  0x6d   :  { %v1031_v44 = vor.u32 %v1216_v43, %v1030_v42 }
  0x6e   :  { %642 = vmatpush.bf16.msra.mxu3 %v1095_v46 }
  0x72   :  { %782 = vmatpush.bf16.msrb.mxu3 %v1091_v54  ;;  %v1018_v54 = vld [vmem:[#allocation5 + $0x20] sm:$0xf] }
  0x73   :  { %v1019_v56 = vor.u32 %v1213_v55, %v1018_v54 }
  0x76   :  { %783 = vmatpush.bf16.msrb.mxu3 %v1079_v61 }
  0x7a   :  { %986 = vmatmul.msk.bf16.gmra.mxu0 %vm122_vm0, %v1206_v14  ;;  %784 = vmatpush.bf16.msrb.mxu3 %v1067_v8 }
  0x7b   :  { %994 = vmatmul.msk.bf16.gmra.mxu1 %vm122_vm0, %v1206_v14 }
  0x7e   :  { %785 = vmatpush.bf16.msrb.mxu3 %v1055_v20 }
  0x82   :  { %786 = vmatpush.bf16.msrb.mxu3 %v1043_v32 }
  0x86   :  { %787 = vmatpush.bf16.msrb.mxu3 %v1031_v44 }
  0x8a   :  { %987 = vmatmul.msk.bf16.gmra.mxu0 %vm122_vm0, %v1207_v57  ;;  %788 = vmatpush.bf16.msrb.mxu3 %v1019_v56 }
  0x8b   :  { %995 = vmatmul.msk.bf16.gmra.mxu1 %vm122_vm0, %v1207_v57 }
  0x97   :  { %v156_v0 = vpop.f32.mrf.mxu0 }
  0x98   :  { %v205_v1 = vpop.f32.mrf.mxu1 }
  0x9f   :  { %v158_v2 = vpop.f32.mrf.mxu0 }
  0xa0   :  { %v1415_v3 = vpack.c.bf16 %v158_v2, %v156_v0  ;;  %v207_v4 = vpop.f32.mrf.mxu1  ;;  %v1234_v0 = vld [vmem:[#allocation5 + $0xd0] sm:$0xf0]  ;;  %v1006_v2 = vld [vmem:[#allocation5 + $0x8] sm:$0xf] }
  0xa1   :  { %v1417_v5 = vpack.c.bf16 %v207_v4, %v205_v1  ;;  %v1103_v1 = vor.u32 %v1234_v0, %v1102_v63  ;;  %v1210_v4 = vld [vmem:[#allocation5 + $0x10] sm:$0xf0] }
  0xa2   :  { %594 = vmatmul.bf16.vlgmr.msra.gmra.mxu2 %v1415_v3  ;;  %692 = vmatmul.bf16.vlgmr.msrb.gmra.mxu0 %v1415_v3  ;;  %v1007_v6 = vor.u32 %v1210_v4, %v1006_v2 }
  0xa3   :  { %1176 = vmatmul.msk.bf16.vlgmr.msra.gmra.mxu3 %vm561_vm1, %v1417_v5  ;;  %1184 = vmatmul.msk.bf16.vlgmr.msrb.gmra.mxu1 %vm561_vm1, %v1417_v5 }
  0xa4   :  { %838 = vmatpush.bf16.msrb.mxu2 %v1103_v1  ;;  %789 = vmatpush.bf16.msrb.mxu3 %v1007_v6 }
  0xa7   :  { %v161_v9 = vpop.f32.mrf.mxu0 }
  0xa8   :  { %v210_v10 = vpop.f32.mrf.mxu1 }
  0xaf   :  { %v163_v14 = vpop.f32.mrf.mxu0 }
  0xb0   :  { %v1425_v15 = vpack.c.bf16 %v163_v14, %v161_v9  ;;  %v212_v16 = vpop.f32.mrf.mxu1 }
  0xb1   :  { %v1427_v17 = vpack.c.bf16 %v212_v16, %v210_v10 }
  0xb2   :  { %599 = vmatmul.bf16.gmra.mxu2 %v1425_v15  ;;  %697 = vmatmul.bf16.gmra.mxu0 %v1425_v15 }
  0xb3   :  { %1177 = vmatmul.msk.bf16.gmra.mxu3 %vm561_vm1, %v1427_v17  ;;  %1185 = vmatmul.msk.bf16.gmra.mxu1 %vm561_vm1, %v1427_v17 }
  0xb7   :  { %v166_v21 = vpop.f32.mrf.mxu0 }
  0xb8   :  { %v215_v22 = vpop.f32.mrf.mxu1 }
  0xbf   :  { %v168_v26 = vpop.f32.mrf.mxu0 }
  0xc0   :  { %v1435_v27 = vpack.c.bf16 %v168_v26, %v166_v21  ;;  %v217_v28 = vpop.f32.mrf.mxu1 }
  0xc1   :  { %v1437_v29 = vpack.c.bf16 %v217_v28, %v215_v22 }
  0xc2   :  { %604 = vmatmul.bf16.gmra.mxu2 %v1435_v27  ;;  %702 = vmatmul.bf16.gmra.mxu0 %v1435_v27 }
  0xc3   :  { %1178 = vmatmul.msk.bf16.gmra.mxu3 %vm561_vm1, %v1437_v29  ;;  %1186 = vmatmul.msk.bf16.gmra.mxu1 %vm561_vm1, %v1437_v29 }
  0xc7   :  { %v171_v33 = vpop.f32.mrf.mxu0 }
  0xc8   :  { %v220_v34 = vpop.f32.mrf.mxu1 }
  0xcf   :  { %v173_v38 = vpop.f32.mrf.mxu0 }
  0xd0   :  { %v1445_v39 = vpack.c.bf16 %v173_v38, %v171_v33  ;;  %v222_v40 = vpop.f32.mrf.mxu1 }
  0xd1   :  { %v1447_v41 = vpack.c.bf16 %v222_v40, %v220_v34 }
  0xd2   :  { %609 = vmatmul.bf16.gmra.mxu2 %v1445_v39  ;;  %707 = vmatmul.bf16.gmra.mxu0 %v1445_v39 }
  0xd3   :  { %1179 = vmatmul.msk.bf16.gmra.mxu3 %vm561_vm1, %v1447_v41  ;;  %1187 = vmatmul.msk.bf16.gmra.mxu1 %vm561_vm1, %v1447_v41 }
  0xd7   :  { %v176_v45 = vpop.f32.mrf.mxu0 }
  0xd8   :  { %v225_v46 = vpop.f32.mrf.mxu1 }
  0xdf   :  { %v178_v50 = vpop.f32.mrf.mxu0 }
  0xe0   :  { %v1455_v51 = vpack.c.bf16 %v178_v50, %v176_v45  ;;  %v227_v52 = vpop.f32.mrf.mxu1 }
  0xe1   :  { %v1457_v53 = vpack.c.bf16 %v227_v52, %v225_v46 }
  0xe2   :  { %614 = vmatmul.bf16.gmra.mxu2 %v1455_v51  ;;  %712 = vmatmul.bf16.gmra.mxu0 %v1455_v51 }
  0xe3   :  { %1180 = vmatmul.msk.bf16.gmra.mxu3 %vm561_vm1, %v1457_v53  ;;  %1188 = vmatmul.msk.bf16.gmra.mxu1 %vm561_vm1, %v1457_v53 }
  0xe7   :  { %v181_v57 = vpop.f32.mrf.mxu0 }
  0xe8   :  { %v230_v58 = vpop.f32.mrf.mxu1 }
  0xef   :  { %v183_v59 = vpop.f32.mrf.mxu0 }
  0xf0   :  { %v1465_v60 = vpack.c.bf16 %v183_v59, %v181_v57  ;;  %v232_v61 = vpop.f32.mrf.mxu1 }
  0xf1   :  { %v1467_v62 = vpack.c.bf16 %v232_v61, %v230_v58 }
  0xf2   :  { %619 = vmatmul.bf16.gmra.mxu2 %v1465_v60  ;;  %717 = vmatmul.bf16.gmra.mxu0 %v1465_v60 }
  0xf3   :  { %1181 = vmatmul.msk.bf16.gmra.mxu3 %vm561_vm1, %v1467_v62  ;;  %1189 = vmatmul.msk.bf16.gmra.mxu1 %vm561_vm1, %v1467_v62 }
  0xf7   :  { %v186_v7 = vpop.f32.mrf.mxu0 }
  0xf8   :  { %v235_v8 = vpop.f32.mrf.mxu1 }
  0xff   :  { %v188_v9 = vpop.f32.mrf.mxu0 }
 0x100   :  { %v1475_v10 = vpack.c.bf16 %v188_v9, %v186_v7  ;;  %v237_v11 = vpop.f32.mrf.mxu1 }
 0x101   :  { %v1477_v12 = vpack.c.bf16 %v237_v11, %v235_v8 }
 0x102   :  { %624 = vmatmul.bf16.gmra.mxu2 %v1475_v10  ;;  %722 = vmatmul.bf16.gmra.mxu0 %v1475_v10 }
 0x103   :  { %1182 = vmatmul.msk.bf16.gmra.mxu3 %vm561_vm1, %v1477_v12  ;;  %1190 = vmatmul.msk.bf16.gmra.mxu1 %vm561_vm1, %v1477_v12 }
 0x107   :  { %v191_v13 = vpop.f32.mrf.mxu0 }
 0x108   :  { %v240_v14 = vpop.f32.mrf.mxu1 }
 0x10f   :  { %v193_v16 = vpop.f32.mrf.mxu0 }
 0x110   :  { %v1485_v18 = vpack.c.bf16 %v193_v16, %v191_v13  ;;  %v242_v19 = vpop.f32.mrf.mxu1 }
 0x111   :  { %v1487_v20 = vpack.c.bf16 %v242_v19, %v240_v14 }
 0x112   :  { %629 = vmatmul.bf16.gmra.mxu2 %v1485_v18  ;;  %727 = vmatmul.bf16.gmra.mxu0 %v1485_v18 }
 0x113   :  { %1183 = vmatmul.msk.bf16.gmra.mxu3 %vm561_vm1, %v1487_v20  ;;  %1191 = vmatmul.msk.bf16.gmra.mxu1 %vm561_vm1, %v1487_v20 }
 0x11f   :  { %v693_v21 = vpop.f32.mrf.mxu0 }
 0x120   :  { %v742_v22 = vpop.f32.mrf.mxu1 }
 0x121   :  { %v743_v23 = vadd.f32 %v742_v22, %v693_v21 }
 0x122   :  { %1192 = vmatmul.msk.bf16.vlgmr.msrb.gmra.mxu2 %vm561_vm1, %v1417_v5 }
 0x123   :  { %881 = vst [vmem:[#allocation7 + $0x8] sm:$0xff] %v743_v23  ;;  %790 = vmatmul.bf16.vlgmr.msrb.gmra.mxu3 %v1415_v3 }
 0x125   :  { %v595_v24 = vpop.f32.mrf.mxu2 }
 0x126   :  { %v644_v25 = vpop.f32.mrf.mxu3 }
 0x127   :  { %v645_v26 = vadd.f32 %v644_v25, %v595_v24  ;;  %v695_v28 = vpop.f32.mrf.mxu0 }
 0x128   :  { %v744_v30 = vpop.f32.mrf.mxu1 }
 0x129   :  { %880 = vst [vmem:[#allocation7] sm:$0xff] %v645_v26  ;;  %v745_v31 = vadd.f32 %v744_v30, %v695_v28 }
 0x12b   :  { %884 = vst [vmem:[#allocation7 + $0x20] sm:$0xff] %v745_v31 }
 0x12d   :  { %v597_v32 = vpop.f32.mrf.mxu2 }
 0x12e   :  { %v646_v33 = vpop.f32.mrf.mxu3 }
 0x12f   :  { %v647_v34 = vadd.f32 %v646_v33, %v597_v32  ;;  %v698_v35 = vpop.f32.mrf.mxu0 }
 0x130   :  { %v747_v36 = vpop.f32.mrf.mxu1 }
 0x131   :  { %883 = vst [vmem:[#allocation7 + $0x18] sm:$0xff] %v647_v34  ;;  %v748_v37 = vadd.f32 %v747_v36, %v698_v35 }
 0x132   :  { %1193 = vmatmul.msk.bf16.gmra.mxu2 %vm561_vm1, %v1427_v17 }
 0x133   :  { %887 = vst [vmem:[#allocation7 + $0x38] sm:$0xff] %v748_v37  ;;  %795 = vmatmul.bf16.gmra.mxu3 %v1425_v15 }
 0x135   :  { %v600_v3 = vpop.f32.mrf.mxu2 }
 0x136   :  { %v649_v5 = vpop.f32.mrf.mxu3 }
 0x137   :  { %v650_v38 = vadd.f32 %v649_v5, %v600_v3  ;;  %v700_v40 = vpop.f32.mrf.mxu0 }
 0x138   :  { %v749_v42 = vpop.f32.mrf.mxu1 }
 0x139   :  { %886 = vst [vmem:[#allocation7 + $0x30] sm:$0xff] %v650_v38  ;;  %v750_v43 = vadd.f32 %v749_v42, %v700_v40 }
 0x13b   :  { %890 = vst [vmem:[#allocation7 + $0x50] sm:$0xff] %v750_v43 }
 0x13d   :  { %v602_v44 = vpop.f32.mrf.mxu2 }
 0x13e   :  { %v651_v45 = vpop.f32.mrf.mxu3 }
 0x13f   :  { %v652_v46 = vadd.f32 %v651_v45, %v602_v44  ;;  %v703_v47 = vpop.f32.mrf.mxu0 }
 0x140   :  { %v752_v48 = vpop.f32.mrf.mxu1 }
 0x141   :  { %889 = vst [vmem:[#allocation7 + $0x48] sm:$0xff] %v652_v46  ;;  %v753_v49 = vadd.f32 %v752_v48, %v703_v47 }
 0x142   :  { %1194 = vmatmul.msk.bf16.gmra.mxu2 %vm561_vm1, %v1437_v29 }
 0x143   :  { %893 = vst [vmem:[#allocation7 + $0x68] sm:$0xff] %v753_v49  ;;  %800 = vmatmul.bf16.gmra.mxu3 %v1435_v27 }
 0x145   :  { %v605_v15 = vpop.f32.mrf.mxu2 }
 0x146   :  { %v654_v17 = vpop.f32.mrf.mxu3 }
 0x147   :  { %v655_v50 = vadd.f32 %v654_v17, %v605_v15  ;;  %v705_v52 = vpop.f32.mrf.mxu0 }
 0x148   :  { %v754_v54 = vpop.f32.mrf.mxu1 }
 0x149   :  { %892 = vst [vmem:[#allocation7 + $0x60] sm:$0xff] %v655_v50  ;;  %v755_v55 = vadd.f32 %v754_v54, %v705_v52 }
 0x14b   :  { %896 = vst [vmem:[#allocation7 + $0x80] sm:$0xff] %v755_v55 }
 0x14d   :  { %v607_v56 = vpop.f32.mrf.mxu2 }
 0x14e   :  { %v656_v57 = vpop.f32.mrf.mxu3 }
 0x14f   :  { %v657_v58 = vadd.f32 %v656_v57, %v607_v56  ;;  %v708_v59 = vpop.f32.mrf.mxu0 }
 0x150   :  { %v757_v61 = vpop.f32.mrf.mxu1 }
 0x151   :  { %895 = vst [vmem:[#allocation7 + $0x78] sm:$0xff] %v657_v58  ;;  %v758_v63 = vadd.f32 %v757_v61, %v708_v59 }
 0x152   :  { %1195 = vmatmul.msk.bf16.gmra.mxu2 %vm561_vm1, %v1447_v41 }
 0x153   :  { %899 = vst [vmem:[#allocation7 + $0x98] sm:$0xff] %v758_v63  ;;  %805 = vmatmul.bf16.gmra.mxu3 %v1445_v39 }
 0x155   :  { %v610_v27 = vpop.f32.mrf.mxu2 }
 0x156   :  { %v659_v29 = vpop.f32.mrf.mxu3 }
 0x157   :  { %v660_v0 = vadd.f32 %v659_v29, %v610_v27  ;;  %v710_v1 = vpop.f32.mrf.mxu0 }
 0x158   :  { %v759_v2 = vpop.f32.mrf.mxu1 }
 0x159   :  { %898 = vst [vmem:[#allocation7 + $0x90] sm:$0xff] %v660_v0  ;;  %v760_v4 = vadd.f32 %v759_v2, %v710_v1 }
 0x15b   :  { %902 = vst [vmem:[#allocation7 + $0xb0] sm:$0xff] %v760_v4 }
 0x15d   :  { %v612_v6 = vpop.f32.mrf.mxu2 }
 0x15e   :  { %v661_v7 = vpop.f32.mrf.mxu3 }
 0x15f   :  { %v662_v8 = vadd.f32 %v661_v7, %v612_v6  ;;  %v713_v9 = vpop.f32.mrf.mxu0 }
 0x160   :  { %v762_v11 = vpop.f32.mrf.mxu1 }
 0x161   :  { %901 = vst [vmem:[#allocation7 + $0xa8] sm:$0xff] %v662_v8  ;;  %v763_v13 = vadd.f32 %v762_v11, %v713_v9 }
 0x162   :  { %1196 = vmatmul.msk.bf16.gmra.mxu2 %vm561_vm1, %v1457_v53 }
 0x163   :  { %905 = vst [vmem:[#allocation7 + $0xc8] sm:$0xff] %v763_v13  ;;  %810 = vmatmul.bf16.gmra.mxu3 %v1455_v51 }
 0x165   :  { %v615_v39 = vpop.f32.mrf.mxu2 }
 0x166   :  { %v664_v41 = vpop.f32.mrf.mxu3 }
 0x167   :  { %v665_v14 = vadd.f32 %v664_v41, %v615_v39  ;;  %v715_v16 = vpop.f32.mrf.mxu0 }
 0x168   :  { %v764_v19 = vpop.f32.mrf.mxu1 }
 0x169   :  { %904 = vst [vmem:[#allocation7 + $0xc0] sm:$0xff] %v665_v14  ;;  %v765_v21 = vadd.f32 %v764_v19, %v715_v16 }
 0x16b   :  { %908 = vst [vmem:[#allocation7 + $0xe0] sm:$0xff] %v765_v21 }
 0x16d   :  { %v617_v22 = vpop.f32.mrf.mxu2 }
 0x16e   :  { %v666_v23 = vpop.f32.mrf.mxu3 }
 0x16f   :  { %v667_v24 = vadd.f32 %v666_v23, %v617_v22  ;;  %v718_v25 = vpop.f32.mrf.mxu0 }
 0x170   :  { %v767_v26 = vpop.f32.mrf.mxu1 }
 0x171   :  { %907 = vst [vmem:[#allocation7 + $0xd8] sm:$0xff] %v667_v24  ;;  %v768_v28 = vadd.f32 %v767_v26, %v718_v25 }
 0x172   :  { %1197 = vmatmul.msk.bf16.gmra.mxu2 %vm561_vm1, %v1467_v62 }
 0x173   :  { %911 = vst [vmem:[#allocation7 + $0xf8] sm:$0xff] %v768_v28  ;;  %815 = vmatmul.bf16.gmra.mxu3 %v1465_v60 }
 0x175   :  { %v620_v51 = vpop.f32.mrf.mxu2 }
 0x176   :  { %v669_v53 = vpop.f32.mrf.mxu3 }
 0x177   :  { %v670_v30 = vadd.f32 %v669_v53, %v620_v51  ;;  %v720_v31 = vpop.f32.mrf.mxu0 }
 0x178   :  { %v769_v32 = vpop.f32.mrf.mxu1 }
 0x179   :  { %910 = vst [vmem:[#allocation7 + $0xf0] sm:$0xff] %v670_v30  ;;  %v770_v33 = vadd.f32 %v769_v32, %v720_v31 }
 0x17b   :  { %914 = vst [vmem:[#allocation7 + $0x110] sm:$0xff] %v770_v33 }
 0x17d   :  { %v622_v34 = vpop.f32.mrf.mxu2 }
 0x17e   :  { %v671_v35 = vpop.f32.mrf.mxu3 }
 0x17f   :  { %v672_v36 = vadd.f32 %v671_v35, %v622_v34  ;;  %v723_v37 = vpop.f32.mrf.mxu0 }
 0x180   :  { %v772_v3 = vpop.f32.mrf.mxu1 }
 0x181   :  { %913 = vst [vmem:[#allocation7 + $0x108] sm:$0xff] %v672_v36  ;;  %v773_v5 = vadd.f32 %v772_v3, %v723_v37 }
 0x182   :  { %1198 = vmatmul.msk.bf16.gmra.mxu2 %vm561_vm1, %v1477_v12 }
 0x183   :  { %917 = vst [vmem:[#allocation7 + $0x128] sm:$0xff] %v773_v5  ;;  %820 = vmatmul.bf16.gmra.mxu3 %v1475_v10 }
 0x185   :  { %v625_v60 = vpop.f32.mrf.mxu2 }
 0x186   :  { %v674_v62 = vpop.f32.mrf.mxu3 }
 0x187   :  { %v675_v38 = vadd.f32 %v674_v62, %v625_v60  ;;  %v725_v40 = vpop.f32.mrf.mxu0 }
 0x188   :  { %v774_v42 = vpop.f32.mrf.mxu1 }
 0x189   :  { %916 = vst [vmem:[#allocation7 + $0x120] sm:$0xff] %v675_v38  ;;  %v775_v43 = vadd.f32 %v774_v42, %v725_v40 }
 0x18b   :  { %920 = vst [vmem:[#allocation7 + $0x140] sm:$0xff] %v775_v43 }
 0x18d   :  { %v627_v44 = vpop.f32.mrf.mxu2 }
 0x18e   :  { %v676_v45 = vpop.f32.mrf.mxu3 }
 0x18f   :  { %v677_v46 = vadd.f32 %v676_v45, %v627_v44  ;;  %v728_v47 = vpop.f32.mrf.mxu0 }
 0x190   :  { %v777_v48 = vpop.f32.mrf.mxu1 }
 0x191   :  { %919 = vst [vmem:[#allocation7 + $0x138] sm:$0xff] %v677_v46  ;;  %v778_v49 = vadd.f32 %v777_v48, %v728_v47 }
 0x192   :  { %1199 = vmatmul.msk.bf16.gmra.mxu2 %vm561_vm1, %v1487_v20 }
 0x193   :  { %923 = vst [vmem:[#allocation7 + $0x158] sm:$0xff] %v778_v49  ;;  %825 = vmatmul.bf16.gmra.mxu3 %v1485_v18 }
 0x195   :  { %v630_v10 = vpop.f32.mrf.mxu2 }
 0x196   :  { %v679_v12 = vpop.f32.mrf.mxu3 }
 0x197   :  { %v680_v15 = vadd.f32 %v679_v12, %v630_v10  ;;  %v730_v17 = vpop.f32.mrf.mxu0 }
 0x198   :  { %v779_v50 = vpop.f32.mrf.mxu1 }
 0x199   :  { %922 = vst [vmem:[#allocation7 + $0x150] sm:$0xff] %v680_v15  ;;  %v780_v52 = vadd.f32 %v779_v50, %v730_v17 }
 0x19b   :  { %926 = vst [vmem:[#allocation7 + $0x170] sm:$0xff] %v780_v52 }
 0x19d   :  { %v632_v54 = vpop.f32.mrf.mxu2 }
 0x19e   :  { %v681_v55 = vpop.f32.mrf.mxu3 }
 0x19f   :  { %v682_v56 = vadd.f32 %v681_v55, %v632_v54 }
 0x1a1   :  { %925 = vst [vmem:[#allocation7 + $0x168] sm:$0xff] %v682_v56 }
 0x1a5   :  { %v840_v57 = vpop.f32.mrf.mxu2 }
 0x1a6   :  { %v791_v58 = vpop.f32.mrf.mxu3 }
 0x1a7   :  { %v841_v59 = vadd.f32 %v840_v57, %v791_v58 }
 0x1a9   :  { %882 = vst [vmem:[#allocation7 + $0x10] sm:$0xff] %v841_v59 }
 0x1ad   :  { %v842_v20 = vpop.f32.mrf.mxu2 }
 0x1ae   :  { %v793_v61 = vpop.f32.mrf.mxu3 }
 0x1af   :  { %v843_v63 = vadd.f32 %v842_v20, %v793_v61 }
 0x1b1   :  { %885 = vst [vmem:[#allocation7 + $0x28] sm:$0xff] %v843_v63 }
 0x1b5   :  { %v845_v18 = vpop.f32.mrf.mxu2 }
 0x1b6   :  { %v796_v27 = vpop.f32.mrf.mxu3 }
 0x1b7   :  { %v846_v29 = vadd.f32 %v845_v18, %v796_v27 }
 0x1b9   :  { %888 = vst [vmem:[#allocation7 + $0x40] sm:$0xff] %v846_v29 }
 0x1bd   :  { %v847_v0 = vpop.f32.mrf.mxu2 }
 0x1be   :  { %v798_v1 = vpop.f32.mrf.mxu3 }
 0x1bf   :  { %v848_v2 = vadd.f32 %v847_v0, %v798_v1 }
 0x1c1   :  { %891 = vst [vmem:[#allocation7 + $0x58] sm:$0xff] %v848_v2 }
 0x1c5   :  { %v850_v4 = vpop.f32.mrf.mxu2 }
 0x1c6   :  { %v801_v6 = vpop.f32.mrf.mxu3 }
 0x1c7   :  { %v851_v7 = vadd.f32 %v850_v4, %v801_v6 }
 0x1c9   :  { %894 = vst [vmem:[#allocation7 + $0x70] sm:$0xff] %v851_v7 }
 0x1cd   :  { %v852_v8 = vpop.f32.mrf.mxu2 }
 0x1ce   :  { %v803_v9 = vpop.f32.mrf.mxu3 }
 0x1cf   :  { %v853_v11 = vadd.f32 %v852_v8, %v803_v9 }
 0x1d1   :  { %897 = vst [vmem:[#allocation7 + $0x88] sm:$0xff] %v853_v11 }
 0x1d5   :  { %v855_v13 = vpop.f32.mrf.mxu2 }
 0x1d6   :  { %v806_v39 = vpop.f32.mrf.mxu3 }
 0x1d7   :  { %v856_v41 = vadd.f32 %v855_v13, %v806_v39 }
 0x1d9   :  { %900 = vst [vmem:[#allocation7 + $0xa0] sm:$0xff] %v856_v41 }
 0x1dd   :  { %v857_v14 = vpop.f32.mrf.mxu2 }
 0x1de   :  { %v808_v16 = vpop.f32.mrf.mxu3 }
 0x1df   :  { %v858_v19 = vadd.f32 %v857_v14, %v808_v16 }
 0x1e1   :  { %903 = vst [vmem:[#allocation7 + $0xb8] sm:$0xff] %v858_v19 }
 0x1e5   :  { %v860_v21 = vpop.f32.mrf.mxu2 }
 0x1e6   :  { %v811_v22 = vpop.f32.mrf.mxu3 }
 0x1e7   :  { %v861_v23 = vadd.f32 %v860_v21, %v811_v22 }
 0x1e9   :  { %906 = vst [vmem:[#allocation7 + $0xd0] sm:$0xff] %v861_v23 }
 0x1ed   :  { %v862_v24 = vpop.f32.mrf.mxu2 }
 0x1ee   :  { %v813_v25 = vpop.f32.mrf.mxu3 }
 0x1ef   :  { %v863_v26 = vadd.f32 %v862_v24, %v813_v25 }
 0x1f1   :  { %909 = vst [vmem:[#allocation7 + $0xe8] sm:$0xff] %v863_v26 }
 0x1f5   :  { %v865_v28 = vpop.f32.mrf.mxu2 }
 0x1f6   :  { %v816_v51 = vpop.f32.mrf.mxu3 }
 0x1f7   :  { %v866_v53 = vadd.f32 %v865_v28, %v816_v51 }
 0x1f9   :  { %912 = vst [vmem:[#allocation7 + $0x100] sm:$0xff] %v866_v53 }
 0x1fd   :  { %v867_v30 = vpop.f32.mrf.mxu2 }
 0x1fe   :  { %v818_v31 = vpop.f32.mrf.mxu3 }
 0x1ff   :  { %v868_v32 = vadd.f32 %v867_v30, %v818_v31 }
 0x201   :  { %915 = vst [vmem:[#allocation7 + $0x118] sm:$0xff] %v868_v32 }
 0x205   :  { %v870_v33 = vpop.f32.mrf.mxu2 }
 0x206   :  { %v821_v34 = vpop.f32.mrf.mxu3 }
 0x207   :  { %v871_v35 = vadd.f32 %v870_v33, %v821_v34 }
 0x209   :  { %918 = vst [vmem:[#allocation7 + $0x130] sm:$0xff] %v871_v35 }
 0x20d   :  { %v872_v36 = vpop.f32.mrf.mxu2 }
 0x20e   :  { %v823_v37 = vpop.f32.mrf.mxu3 }
 0x20f   :  { %v873_v3 = vadd.f32 %v872_v36, %v823_v37 }
 0x211   :  { %921 = vst [vmem:[#allocation7 + $0x148] sm:$0xff] %v873_v3 }
 0x215   :  { %v875_v5 = vpop.f32.mrf.mxu2 }
 0x216   :  { %v826_v60 = vpop.f32.mrf.mxu3 }
 0x217   :  { %v876_v62 = vadd.f32 %v875_v5, %v826_v60 }
 0x219   :  { %924 = vst [vmem:[#allocation7 + $0x160] sm:$0xff] %v876_v62 }
 0x21d   :  { %v877_v38 = vpop.f32.mrf.mxu2 }
 0x21e   :  { %v828_v40 = vpop.f32.mrf.mxu3 }
 0x21f   :  { %v878_v42 = vadd.f32 %v877_v38, %v828_v40 }
 0x221   :  { %927 = vst [vmem:[#allocation7 + $0x178] sm:$0xff] %v878_v42 }
 0x222   :  { %940 = dma.vmem_to_hbm [thread:$0]  %s933_s13, 6144, %s935_s16, [#allocation4], %s1347_s17, %s1347_s17, %s1348_s18  }
 0x223   :  { %1338 = dma.done.wait [#allocation4], 6144  }
 0x224   :  { %1339 = vsyncadd [#allocation4], 4294961152 }
 0x225   :  { %945 = vsyncpa [#allocation3], 1 }
 0x226   :  { %946 = vsyncpa [#allocation6], 1 }
 0x227   :  { %947 = vsyncpa [#allocation4], 1 }

</bundles_post_ra>
